<compile_context>
chip_gen: v7x
topology: tpu7x:2x2x1
jax: 0.10.0
libtpu: 0.0.40
codegen_flags: <defaults>
</compile_context>

<pallas_src>
import jax
import jax.numpy as jnp
from jax.experimental import pallas as pl
from jax.experimental.pallas import tpu as pltpu


def _subsample_kernel(x_ref, p_ref, w_ref, b_ref, o_ref):
    # x_ref: (br, H*W)      lane-dense input rows, one row per (n, c)
    # p_ref: (H*W, Hh*Wh)   constant 0/1 pooling matrix (resident across steps)
    # w_ref, b_ref: (br, 1) per-row (= per-channel) scale / bias
    # o_ref: (br, Hh*Wh)    lane-dense output rows
    # MXU: 2x2 window SUM (== avg * 4), accumulated in f32.  VPU: one FMA.
    s = jnp.dot(x_ref[...], p_ref[...], preferred_element_type=jnp.float32)
    o_ref[...] = (s * w_ref[...] + b_ref[...]).astype(o_ref.dtype)


def _pick_block_rows(nc, hw, itemsize, *, cap_rows=1024, block_bytes_budget=8 << 20):
    """Rows per grid step: whole array if it fits, else an 8-aligned block under budget."""
    if nc <= cap_rows and nc * hw * itemsize <= block_bytes_budget:
        return nc                                   # full-dim block (always legal)
    by_bytes = (block_bytes_budget // max(hw * itemsize, 1)) // 8 * 8
    return int(max(8, min(cap_rows, by_bytes)))     # multiple of 8 for sublane alignment


def _pooling_matrix(H, W, dtype):
    """P[h*W + w, (h//2)*Wh + (w//2)] = 1 : x_row @ P == 2x2 window sums (row-major)."""
    Hh, Wh = H // 2, W // 2
    rows = jnp.arange(H * W)
    h, w = rows // W, rows % W
    cols = (h // 2) * Wh + (w // 2)
    return jnp.zeros((H * W, Hh * Wh), dtype).at[rows, cols].set(1)


def subsample_forward(x, weight, bias):
    N, C, H, W = x.shape
    assert H % 2 == 0 and W % 2 == 0, "AvgPool2d((2,2),2) path assumes even H, W"
    Hh, Wh = H // 2, W // 2
    NC, HW, HhWh = N * C, H * W, Hh * Wh

    # Free, contiguous reshape: (N,C,H,W) -> (NC, HW); lanes = HW (dense).
    x2d = x.reshape(NC, HW)

    # Constant pooling matrix + tiny per-row scale/bias vectors.
    P = _pooling_matrix(H, W, x.dtype)
    w_nc = jnp.tile(weight.astype(jnp.float32), N).reshape(NC, 1)
    b_nc = jnp.tile(bias.astype(jnp.float32), N).reshape(NC, 1)

    br = _pick_block_rows(NC, HW, x.dtype.itemsize)
    grid = (pl.cdiv(NC, br),)                        # tail block masked by Pallas

    out = pl.pallas_call(
        _subsample_kernel,
        out_shape=jax.ShapeDtypeStruct((NC, HhWh), x.dtype),
        grid=grid,
        in_specs=[
            pl.BlockSpec((br, HW), lambda i: (i, 0)),        # x rows (lane-dense)
            pl.BlockSpec((HW, HhWh), lambda i: (0, 0)),      # pooling matrix (resident)
            pl.BlockSpec((br, 1), lambda i: (i, 0)),         # per-row weight
            pl.BlockSpec((br, 1), lambda i: (i, 0)),         # per-row bias
        ],
        out_specs=pl.BlockSpec((br, HhWh), lambda i: (i, 0)),
        compiler_params=pltpu.CompilerParams(
            dimension_semantics=("parallel",),
            vmem_limit_bytes=32 * 1024 * 1024,
        ),
    )(x2d, P, w_nc, b_nc)

    # Free reshape back to the PyTorch NCHW-pooled layout.
    return out.reshape(N, C, Hh, Wh)


if __name__ == "__main__":
    key = jax.random.PRNGKey(0)
    kx, kw = jax.random.split(key)

    N, C, H, W = 2, 4, 16, 16
    x = jax.random.normal(kx, (N, C, H, W), dtype=jnp.float32)

    # deterministic param init matching __init__: torch.rand(1)*1.2 - 0.6, bias = 0.0
    weight = jax.random.uniform(kw, (C,), dtype=jnp.float32) * 1.2 - 0.6
    bias = jnp.zeros((C,), dtype=jnp.float32)

    out = jax.block_until_ready(subsample_forward(x, weight, bias))

    # pure-JAX reference check
    ref = x.reshape(N, C, H // 2, 2, W // 2, 2).mean(axis=(3, 5))
    ref = ref * 4.0 * weight[None, :, None, None] + bias[None, :, None, None]

    assert out.shape == (N, C, H // 2, W // 2), out.shape
    assert jnp.allclose(out, ref, atol=1e-5, rtol=1e-5)
    print("KERNEL_OK")
</pallas_src>

<mosaic_0001>
module attributes {stable_mosaic.version = 11 : i64} {
  func.func @_subsample_kernel(%arg0: i32, %arg1: memref<8x256xf32, #tpu.memory_space<vmem>>, %arg2: memref<256x64xf32, #tpu.memory_space<vmem>>, %arg3: memref<8x1xf32, #tpu.memory_space<vmem>>, %arg4: memref<8x1xf32, #tpu.memory_space<vmem>>, %arg5: memref<8x64xf32, #tpu.memory_space<vmem>>) attributes {dimension_semantics = [#tpu.dimension_semantics<parallel>], iteration_bounds = array<i64: 1>, scalar_prefetch = 0 : i64, scratch_operands = 0 : i64, tpu.core_type = #tpu.core_type<tc>, window_params = [{transform_indices = @transform_0, window_bounds = array<i64: 8, 256>}, {pipeline_mode = #tpu.pipeline_mode<synchronous>, transform_indices = @transform_1, window_bounds = array<i64: 256, 64>}, {transform_indices = @transform_2, window_bounds = array<i64: 8, 1>}, {transform_indices = @transform_3, window_bounds = array<i64: 8, 1>}, {transform_indices = @transform_4, window_bounds = array<i64: 8, 64>}]} {
    %c0 = arith.constant 0 : index
    %c0_0 = arith.constant 0 : index
    %0 = vector.load %arg1[%c0, %c0_0] : memref<8x256xf32, #tpu.memory_space<vmem>>, vector<8x256xf32>
    %c0_1 = arith.constant 0 : index
    %c0_2 = arith.constant 0 : index
    %1 = vector.load %arg2[%c0_1, %c0_2] : memref<256x64xf32, #tpu.memory_space<vmem>>, vector<256x64xf32>
    %cst = arith.constant dense<0.000000e+00> : vector<8x64xf32>
    %2 = tpu.matmul %0, %1, %cst {dimension_numbers = #tpu.dot_dimension_numbers<[1], [0], [0], [1], [0, 0, 1, 1], [], []>} : vector<8x256xf32>, vector<256x64xf32>, vector<8x64xf32> -> vector<8x64xf32>
    %c0_3 = arith.constant 0 : index
    %c0_4 = arith.constant 0 : index
    %3 = vector.load %arg3[%c0_3, %c0_4] : memref<8x1xf32, #tpu.memory_space<vmem>>, vector<8x1xf32>
    %4 = vector.broadcast %3 : vector<8x1xf32> to vector<8x64xf32>
    %5 = arith.mulf %2, %4 : vector<8x64xf32>
    %c0_5 = arith.constant 0 : index
    %c0_6 = arith.constant 0 : index
    %6 = vector.load %arg4[%c0_5, %c0_6] : memref<8x1xf32, #tpu.memory_space<vmem>>, vector<8x1xf32>
    %7 = vector.broadcast %6 : vector<8x1xf32> to vector<8x64xf32>
    %8 = arith.addf %5, %7 : vector<8x64xf32>
    %c0_7 = arith.constant 0 : index
    %c0_8 = arith.constant 0 : index
    %9 = vector.load %arg5[%c0_7, %c0_8] : memref<8x64xf32, #tpu.memory_space<vmem>>, vector<8x64xf32>
    tpu.vector_store %arg5[%c0_7, %c0_8], %8 {strides = array<i32>} : memref<8x64xf32, #tpu.memory_space<vmem>>, vector<8x64xf32>,
    return
  }
  func.func @transform_0(%arg0: i32) -> (i32, i32) {
    %c0_i32 = arith.constant 0 : i32
    %c0_i32_0 = arith.constant 0 : i32
    return %arg0, %c0_i32 : i32, i32
  }
  func.func @transform_1(%arg0: i32) -> (i32, i32) {
    %c0_i32 = arith.constant 0 : i32
    %c0_i32_0 = arith.constant 0 : i32
    %c0_i32_1 = arith.constant 0 : i32
    return %c0_i32, %c0_i32_0 : i32, i32
  }
  func.func @transform_2(%arg0: i32) -> (i32, i32) {
    %c0_i32 = arith.constant 0 : i32
    %c0_i32_0 = arith.constant 0 : i32
    return %arg0, %c0_i32 : i32, i32
  }
  func.func @transform_3(%arg0: i32) -> (i32, i32) {
    %c0_i32 = arith.constant 0 : i32
    %c0_i32_0 = arith.constant 0 : i32
    return %arg0, %c0_i32 : i32, i32
  }
  func.func @transform_4(%arg0: i32) -> (i32, i32) {
    %c0_i32 = arith.constant 0 : i32
    %c0_i32_0 = arith.constant 0 : i32
    return %arg0, %c0_i32 : i32, i32
  }
}

</mosaic_0001>

<bundles_post_ra>
// kernel: tpu_custom_call.1
= control target key start
LH: loop header
LB: loop body
LE: loop exit
PB: predicated region body
PF: predicated region fallthrough
CT: control target
= control target key end

     0   :  { %v246_v7 = vmov 0   ;;  %s393_s0 = inlined_call_operand.vmem [shape: f32[8,256], index: 0, kind: input, shape index: {}]   ;;  %s394_s1 = inlined_call_operand.vmem [shape: f32[256,64], index: 1, kind: input, shape index: {}]   ;;  %s395_s2 = inlined_call_operand.vmem [shape: f32[8,1], index: 2, kind: input, shape index: {}]   ;;  %s396_s3 = inlined_call_operand.vmem [shape: f32[8,1], index: 3, kind: input, shape index: {}]   ;;  %s397_s4 = inlined_call_operand.hbm [shape: f32[8,64], index: 4, kind: output, shape index: {}]  }
   0x1   :  { %v36_v0 = vld [vmem:[%s394_s1 + $0x80] sm:$0xff]  ;;  %v37_v1 = vld [vmem:[%s394_s1 + $0x88] sm:$0xff]  ;;  %v38_v5 = vld [vmem:[%s394_s1 + $0x90] sm:$0xff]  ;;  %221 = vset.pattern.permute.xlu0 %v246_v7 }
   0x2   :  { %v20_v2 = vld [vmem:[%s394_s1] sm:$0xff]  ;;  %v187_v3 = vpack.c.bf16 %v37_v1, %v36_v0  ;;  %v21_v4 = vld [vmem:[%s394_s1 + $0x8] sm:$0xff]  ;;  %v39_v6 = vld [vmem:[%s394_s1 + $0x98] sm:$0xff] }
   0x3   :  { %v189_v8 = vpack.c.bf16 %v21_v4, %v20_v2  ;;  %v191_v9 = vpack.c.bf16 %v39_v6, %v38_v5  ;;  %v22_v10 = vld [vmem:[%s394_s1 + $0x10] sm:$0xff]  ;;  %v23_v11 = vld [vmem:[%s394_s1 + $0x18] sm:$0xff]  ;;  %v40_v12 = vld [vmem:[%s394_s1 + $0xa0] sm:$0xff] }
   0x4   :  { %188 = vmatprep.subr.bf16.mxu0 %v187_v3  ;;  %v41_v13 = vld [vmem:[%s394_s1 + $0xa8] sm:$0xff]  ;;  %v193_v14 = vpack.c.bf16 %v23_v11, %v22_v10  ;;  %v24_v16 = vld [vmem:[%s394_s1 + $0x20] sm:$0xff]  ;;  %v42_v18 = vld [vmem:[%s394_s1 + $0xb0] sm:$0xff] }
   0x5   :  { %190 = vmatpush3.bf16.msra.mxu0 %v189_v8  ;;  %v195_v15 = vpack.c.bf16 %v41_v13, %v40_v12  ;;  %v25_v17 = vld [vmem:[%s394_s1 + $0x28] sm:$0xff]  ;;  %v43_v19 = vld [vmem:[%s394_s1 + $0xb8] sm:$0xff]  ;;  %v26_v22 = vld [vmem:[%s394_s1 + $0x30] sm:$0xff] }
   0x6   :  { %192 = vmatprep.subr.bf16.mxu0 %v191_v9  ;;  %v197_v20 = vpack.c.bf16 %v25_v17, %v24_v16  ;;  %v199_v21 = vpack.c.bf16 %v43_v19, %v42_v18  ;;  %v27_v23 = vld [vmem:[%s394_s1 + $0x38] sm:$0xff]  ;;  %v44_v24 = vld [vmem:[%s394_s1 + $0xc0] sm:$0xff]  ;;  %v45_v25 = vld [vmem:[%s394_s1 + $0xc8] sm:$0xff] }
   0x7   :  { %v19_v26 = vld [vmem:[%s393_s0 + $0x8] sm:$0xff]  ;;  %v122_v27 = vld [vmem:[%s395_s2] sm:$0xff]  ;;  %v201_v28 = vpack.c.bf16 %v27_v23, %v26_v22 }
   0x8   :  { %116 = vmatprep.mubr.f32.mxu0 %v19_v26  ;;  %125 = vperm.xlu0 %221, %v122_v27  }
   0x9   :  { %194 = vmatpush3.bf16.msra.mxu0 %v193_v14 }
   0xa   :  { %196 = vmatprep.subr.bf16.mxu0 %v195_v15 }
   0xd   :  { %198 = vmatpush3.bf16.msra.mxu0 %v197_v20 }
   0xe   :  { %9 = vsyncpa [#allocation3], 0  ;;  %200 = vmatprep.subr.bf16.mxu0 %v199_v21  ;;  %v203_v29 = vpack.c.bf16 %v45_v25, %v44_v24  ;;  %v28_v30 = vld [vmem:[%s394_s1 + $0x40] sm:$0xff]  ;;  %v29_v31 = vld [vmem:[%s394_s1 + $0x48] sm:$0xff]  ;;  %s247_s7 = smov [#allocation2]   ;;  %vm136_vm0 = vcmask 523264  }
   0xf   :  { %v129_v32 = vld [vmem:[%s396_s3] sm:$0xff]  ;;  %v46_v33 = vld [vmem:[%s394_s1 + $0xd0] sm:$0xff]  ;;  %v47_v34 = vld [vmem:[%s394_s1 + $0xd8] sm:$0xff]  ;;  %v205_v35 = vpack.c.bf16 %v29_v31, %v28_v30  ;;  %s144_s8 = sshll.u32 %s247_s7, 4  ;;  %s145_s8 = int_to_ptr.vmem [resolvable:$true] %s144_s8 }
  0x10   :  { %132 = vperm.xlu0 %221, %v129_v32   ;;  %v207_v36 = vpack.c.bf16 %v47_v34, %v46_v33  ;;  %v30_v37 = vld [vmem:[%s394_s1 + $0x50] sm:$0xff]  ;;  %v31_v38 = vld [vmem:[%s394_s1 + $0x58] sm:$0xff]  ;;  %v48_v39 = vld [vmem:[%s394_s1 + $0xe0] sm:$0xff]  ;;  %p227_p1 = scmp.lt.s32.totalorder %s145_s8, %s145_s8 }
  0x11   :  { %202 = vmatpush3.bf16.msra.mxu0 %v201_v28  ;;  %v49_v40 = vld [vmem:[%s394_s1 + $0xe8] sm:$0xff]  ;;  %v209_v41 = vpack.c.bf16 %v31_v38, %v30_v37  ;;  %v32_v43 = vld [vmem:[%s394_s1 + $0x60] sm:$0xff]  ;;  %v50_v45 = vld [vmem:[%s394_s1 + $0xf0] sm:$0xff] }
  0x12   :  { %204 = vmatprep.subr.bf16.mxu0 %v203_v29  ;;  %v211_v42 = vpack.c.bf16 %v49_v40, %v48_v39  ;;  %v33_v44 = vld [vmem:[%s394_s1 + $0x68] sm:$0xff]  ;;  %v51_v46 = vld [vmem:[%s394_s1 + $0xf8] sm:$0xff]  ;;  %v34_v49 = vld [vmem:[%s394_s1 + $0x70] sm:$0xff] }
  0x13   :  { %v213_v47 = vpack.c.bf16 %v33_v44, %v32_v43  ;;  %v215_v48 = vpack.c.bf16 %v51_v46, %v50_v45  ;;  %v35_v50 = vld [vmem:[%s394_s1 + $0x78] sm:$0xff]  ;;  %v18_v52 = vld [vmem:[%s393_s0] sm:$0xff]  ;;  %s222_s1 = scalar_lea.vmem %s145_s8, 128 }
  0x14   :  { %v217_v51 = vpack.c.bf16 %v35_v50, %v34_v49  ;;  %p223_p0 = scmp.ne.s32.totalorder %s145_s8, %s222_s1  ;;  %p228_p2 = scmp.lt.s32.totalorder %s222_s1, %s222_s1 }
  0x15   :  { %206 = vmatpush3.bf16.msra.mxu0 %v205_v35 }
  0x16   :  { %208 = vmatprep.subr.bf16.mxu0 %v207_v36  ;;  %p229_p3 = por %p228_p2, %p227_p1 }
  0x18   :  { %p230_p4 = pnand %p229_p3, %p223_p0 }
  0x19   :  { %210 = vmatpush3.bf16.msra.mxu0 %v209_v41 }
  0x1a   :  { %212 = vmatprep.subr.bf16.mxu0 %v211_v42 }
  0x1d   :  { %214 = vmatpush3.bf16.msra.mxu0 %v213_v47 }
  0x1e   :  { %216 = vmatprep.subr.bf16.mxu0 %v215_v48 }
  0x21   :  { %218 = vmatpush3.bf16.msra.mxu0 %v217_v51 }
  0x24   :  { %117 = vmatmul.mubr.f32.vlgmr.msra.gmra.mrb[0].mxu0 %v18_v52 }
  0x87   :  { %v126_v53 = vpop.permute.xlu0 %125 }
  0x8f   :  { %v133_v58 = vpop.permute.xlu0 %132 }
  0xf7   :  { %v184_v54 = vpop.f32.mrb[0].mxu0 }
  0xf8   :  { %v185_v55 = vpop.f32.mrb[1].mxu0 }
  0xf9   :  { %v186_v56 = vadd.f32 %v185_v55, %v184_v54 }
  0xfb   :  { %v128_v57 = vmul.f32 %v186_v56, %v126_v53 }
  0xfd   :  { %v135_v59 = vadd.f32 %v133_v58, %v128_v57 }
  0xff   :  { %137 = vst.msk [vmem:[#allocation2] sm:$0xff] %vm136_vm0, %v135_v59 }
 0x100   :  { %233 = shalt.err (!%p230_p4)
}
 0x101   :  { %s234_s2 = scalar_lea.hbm %s397_s4, 128 }
 0x102   :  { %p235_p5 = scmp.ne.s32.totalorder %s397_s4, %s234_s2  ;;  %p238_p6 = scmp.lt.u32.totalorder %s234_s2, %s397_s4 }
 0x104   :  { %p240_p7 = pnand %p238_p6, %p235_p5 }
 0x106   :  { %243 = shalt.err (!%p240_p7)
}
 0x107   :  { %147 = dma.vmem_to_hbm [thread:$0]  %s145_s8, 128, %s397_s4, [#allocation3]  }
 0x108   :  { %244 = dma.done.wait [#allocation3], 128  }
 0x109   :  { %245 = vsyncadd [#allocation3], 4294967168 }
 0x10a   :  { %151 = vsyncpa [#allocation3], 1 }

</bundles_post_ra>
